<compile_context>
chip_gen: v5e
topology: v5e:2x2
jax: 0.10.0
libtpu: 0.0.40
codegen_flags: <defaults>
</compile_context>

<pallas_src>
import functools

import jax
import jax.numpy as jnp
from jax import lax
from jax.experimental import pallas as pl
from jax.experimental.pallas import tpu as pltpu


# --------------------------------------------------------------------------- #
# Kernels
# --------------------------------------------------------------------------- #
def _attn_single_pass_kernel(q_ref, kv_ref, o_ref, *, c, cout, exp_dtype):
    """Single-pass softmax attention for one (batch, q-tile) grid step.

    q_ref:  [1, C, tq]          bf16  (channels on sublanes, queries on lanes)
    kv_ref: [1, C+Cout+1, Nk]   bf16  (rows: K | V | ones-row for the denom)
    o_ref:  [1, Cout, tq]       f32   (already NCHW-flattened, lane-dense store)
    """
    q = q_ref[0]                                    # [C, tq]
    kv = kv_ref[0]                                  # [C+Cout+1, Nk]
    k = kv[:c]                                      # [C, Nk]
    v = kv[c:]                                      # [Cout+1, Nk]  (last row = 1)

    # sim_T = K^T Q: contract the channel dim of both operands -> [Nk, tq] f32.
    sim = lax.dot_general(k, q, (((0,), (0,)), ((), ())),
                          preferred_element_type=jnp.float32)
    m = jnp.max(sim, axis=0, keepdims=True)          # [1, tq]
    p = jnp.exp((sim - m).astype(exp_dtype))         # [Nk, tq]

    # [Cout+1, Nk] x [Nk, tq] -> [Cout+1, tq]; row `cout` is the softmax denom
    # (the ones row of V), computed on the MXU instead of a cross-lane sum.
    acc = jnp.dot(v, p.astype(v.dtype), preferred_element_type=jnp.float32)
    inv_l = pl.reciprocal(acc[cout:cout + 1], approx=True)       # [1, tq]
    o_ref[0] = (acc[:cout] * inv_l).astype(o_ref.dtype)


def _attn_flash_kernel(q_ref, kv_ref, o_ref, m_sc, acc_sc, *, c, cout, exp_dtype):
    """Online-softmax (flash) step for one (batch, q-tile, k-tile) grid point.

    q_ref:  [1, C, tq]        bf16   resident across the Nk loop
    kv_ref: [1, C+Cout+1, tk] bf16   streamed (K | V | ones)
    o_ref:  [1, Cout, tq]     f32    written once, at the last Nk tile
    m_sc:   [1, tq]           f32    running max
    acc_sc: [Cout+1, tq]      f32    accumulator; last row = running denominator
    """
    ki = pl.program_id(2)

    @pl.when(ki == 0)
    def _():
        m_sc[...] = jnp.full_like(m_sc, -jnp.inf)
        acc_sc[...] = jnp.zeros_like(acc_sc)

    q = q_ref[0]                                    # [C, tq]
    kv = kv_ref[0]                                  # [C+Cout+1, tk]
    k = kv[:c]                                      # [C, tk]
    v = kv[c:]                                      # [Cout+1, tk]

    sim = lax.dot_general(k, q, (((0,), (0,)), ((), ())),
                          preferred_element_type=jnp.float32)    # [tk, tq]
    m_prev = m_sc[...]                                           # [1, tq]
    m_new = jnp.maximum(m_prev, jnp.max(sim, axis=0, keepdims=True))
    alpha = jnp.exp(m_prev - m_new)                              # [1, tq] f32
    p = jnp.exp((sim - m_new).astype(exp_dtype))                 # [tk, tq]

    # [Cout+1, tk] x [tk, tq] -> [Cout+1, tq] (NN MXU form; no transposes).
    pv = jnp.dot(v, p.astype(v.dtype), preferred_element_type=jnp.float32)
    acc_sc[...] = alpha * acc_sc[...] + pv
    m_sc[...] = m_new

    @pl.when(ki == pl.num_programs(2) - 1)
    def _():
        acc = acc_sc[...]
        inv_l = pl.reciprocal(acc[cout:cout + 1], approx=True)   # [1, tq]
        o_ref[0] = (acc[:cout] * inv_l).astype(o_ref.dtype)


# --------------------------------------------------------------------------- #
# Wrapper
# --------------------------------------------------------------------------- #
_TILE_CANDS = (2048, 1024, 512, 256, 128)


def _pick_tile(n, *, min_steps=1, cands=_TILE_CANDS):
    for t in cands:
        if n % t == 0 and n // t >= min_steps:
            return t
    return n


def self_attention_block(query_feats, key_feats, value_feats, params, *,
                         channels, matmul_norm=True, tq=None, tk=None,
                         mxu_dtype=jnp.bfloat16, exp_dtype=None,
                         vmem_limit_bytes=32 * 1024 * 1024):
    """query_feats/key_feats/value_feats: NCHW float32. Returns NCHW float32."""
    B, Cq_in, Hq, Wq = query_feats.shape
    _, Ck_in, Hk, Wk = key_feats.shape
    _, Cv_in, Hv, Wv = value_feats.shape
    assert (Hk, Wk) == (Hv, Wv)
    Nq, Nk = Hq * Wq, Hk * Wk

    # Conv weights [out, in, 1, 1] -> [out, in].
    wq = params["wq"][:, :, 0, 0]
    wk = params["wk"][:, :, 0, 0]
    wv = params["wv"][:, :, 0, 0]
    bq, bk, bv = params["bq"], params["bk"], params["bv"]

    # Fold the softmax scale into the query projection (free at trace time).
    scale = float(channels) ** (-0.5) if matmul_norm else 1.0
    wq = wq * scale
    bq = bq * scale

    C = wq.shape[0]
    Cout = wv.shape[0]

    if exp_dtype is None:
        try:
            kind = jax.devices()[0].device_kind.lower()
        except Exception:  # pragma: no cover
            kind = ""
        # bf16 EUP exp exists on v6e/v7x only; keep f32 exp on v5e / unknown.
        exp_dtype = jnp.bfloat16 if ("v6" in kind or "v7" in kind) else jnp.float32

    # 1x1 convs are tiny-K GEMMs -> leave them to XLA; keep everything in the
    # transposed [B, C, N] layout (N on the 128-lane axis -> lane-dense DMAs,
    # lane-dense scratch/accumulator, lane-dense output store).
    xq = query_feats.reshape(B, Cq_in, Nq)
    xk = key_feats.reshape(B, Ck_in, Nk)
    xv = value_feats.reshape(B, Cv_in, Nk)

    q = jnp.einsum("oc,bcn->bon", wq, xq) + bq[None, :, None]   # [B, C, Nq]
    k = jnp.einsum("oc,bcn->bon", wk, xk) + bk[None, :, None]   # [B, C, Nk]
    v = jnp.einsum("oc,bcn->bon", wv, xv) + bv[None, :, None]   # [B, Cout, Nk]

    # Merge K, V and a ones row (softmax denominator via the MXU) into one
    # streamed operand -> one BlockSpec / one DMA per k step.
    ones = jnp.ones((B, 1, Nk), v.dtype)
    kv = jnp.concatenate([k, v, ones], axis=1).astype(mxu_dtype)  # [B, C+Cout+1, Nk]
    q = q.astype(mxu_dtype)
    Ckv = C + Cout + 1

    # ---- tile selection ---------------------------------------------------- #
    if tq is None:
        # Keep >= 2 parallel grid steps when B == 1 (v7x has 2 TensorCores).
        tq = _pick_tile(Nq, min_steps=(2 if B == 1 else 1))
    if tk is None:
        single_pass_ok = (tq * Nk * 4 <= (4 << 20) and      # f32 score slab
                          Ckv * Nk * 2 * 2 <= (8 << 20))    # double-buffered K|V|1
        if single_pass_ok:
            tk = Nk
        else:
            max_tk = max((8 << 20) // (8 * tq), 128)         # score+p tile budget
            cands = tuple(t for t in _TILE_CANDS if t <= max_tk) or (128,)
            tk = _pick_tile(Nk, cands=cands)
    assert Nq % tq == 0 and Nk % tk == 0, (Nq, tq, Nk, tk)
    single_pass = (tk == Nk)

    cost = pl.CostEstimate(
        flops=2 * B * Nq * Nk * (C + Cout + 1),
        transcendentals=B * Nq * Nk,
        bytes_accessed=int(q.size * 2 + kv.size * 2 + B * Cout * Nq * 4),
    )
    out_shape = jax.ShapeDtypeStruct((B, Cout, Nq), jnp.float32)

    if single_pass:
        kernel = functools.partial(_attn_single_pass_kernel,
                                   c=C, cout=Cout, exp_dtype=exp_dtype)
        out = pl.pallas_call(
            kernel,
            out_shape=out_shape,
            grid_spec=pltpu.PrefetchScalarGridSpec(
                num_scalar_prefetch=0,
                grid=(B, Nq // tq),
                in_specs=[
                    pl.BlockSpec((1, C, tq), lambda b, qi: (b, 0, qi)),
                    pl.BlockSpec((1, Ckv, Nk), lambda b, qi: (b, 0, 0)),
                ],
                out_specs=pl.BlockSpec((1, Cout, tq), lambda b, qi: (b, 0, qi)),
            ),
            compiler_params=pltpu.CompilerParams(
                dimension_semantics=("parallel", "parallel"),
                vmem_limit_bytes=vmem_limit_bytes),
            cost_estimate=cost,
        )(q, kv)
    else:
        kernel = functools.partial(_attn_flash_kernel,
                                   c=C, cout=Cout, exp_dtype=exp_dtype)
        out = pl.pallas_call(
            kernel,
            out_shape=out_shape,
            grid_spec=pltpu.PrefetchScalarGridSpec(
                num_scalar_prefetch=0,
                grid=(B, Nq // tq, Nk // tk),
                in_specs=[
                    pl.BlockSpec((1, C, tq), lambda b, qi, ki: (b, 0, qi)),
                    pl.BlockSpec((1, Ckv, tk), lambda b, qi, ki: (b, 0, ki)),
                ],
                out_specs=pl.BlockSpec((1, Cout, tq), lambda b, qi, ki: (b, 0, qi)),
                scratch_shapes=[
                    pltpu.VMEM((1, tq), jnp.float32),          # running max m
                    pltpu.VMEM((Cout + 1, tq), jnp.float32),   # acc (+ denom row)
                ],
            ),
            compiler_params=pltpu.CompilerParams(
                dimension_semantics=("parallel", "parallel", "arbitrary"),
                vmem_limit_bytes=vmem_limit_bytes),
            cost_estimate=cost,
        )(q, kv)

    # [B, Cout, Nq] is already NCHW-flattened; no transpose needed.
    return out.reshape(B, Cout, Hq, Wq)


# --------------------------------------------------------------------------- #
# Pure-JAX reference (mirror of the PyTorch forward)
# --------------------------------------------------------------------------- #
def _reference(query_feats, key_feats, value_feats, params, *, channels,
               matmul_norm=True):
    B, _, Hq, Wq = query_feats.shape

    def conv1x1(x, w, b):
        y = jnp.einsum("bchw,oc->bohw", x, w[:, :, 0, 0])
        return y + b[None, :, None, None]

    q = conv1x1(query_feats, params["wq"], params["bq"])
    k = conv1x1(key_feats, params["wk"], params["bk"])
    v = conv1x1(value_feats, params["wv"], params["bv"])

    q = q.reshape(*q.shape[:2], -1).transpose(0, 2, 1)      # [B, Nq, C]
    k = k.reshape(*k.shape[:2], -1)                         # [B, C, Nk]
    v = v.reshape(*v.shape[:2], -1).transpose(0, 2, 1)      # [B, Nk, Cout]

    sim = jnp.matmul(q, k)
    if matmul_norm:
        sim = channels ** (-0.5) * sim
    sim = jax.nn.softmax(sim, axis=-1)
    ctx = jnp.matmul(sim, v)                                # [B, Nq, Cout]
    ctx = ctx.transpose(0, 2, 1).reshape(B, -1, Hq, Wq)
    return ctx


if __name__ == "__main__":
    B = 2
    key_in_channels = 4
    query_in_channels = 4
    value_in_channels = 4
    channels = 32          # key/query projection width
    out_channels = 32      # value projection width (with_out=False)
    H = W = 16             # spatial -> N = 256

    key = jax.random.PRNGKey(0)
    ks = jax.random.split(key, 9)

    query_feats = jax.random.normal(ks[0], (B, query_in_channels, H, W), jnp.float32)
    key_feats = jax.random.normal(ks[1], (B, key_in_channels, H, W), jnp.float32)
    value_feats = jax.random.normal(ks[2], (B, value_in_channels, H, W), jnp.float32)

    params = {
        "wq": 0.1 * jax.random.normal(ks[3], (channels, query_in_channels, 1, 1), jnp.float32),
        "bq": 0.1 * jax.random.normal(ks[4], (channels,), jnp.float32),
        "wk": 0.1 * jax.random.normal(ks[5], (channels, key_in_channels, 1, 1), jnp.float32),
        "bk": 0.1 * jax.random.normal(ks[6], (channels,), jnp.float32),
        "wv": 0.1 * jax.random.normal(ks[7], (out_channels, value_in_channels, 1, 1), jnp.float32),
        "bv": 0.1 * jax.random.normal(ks[8], (out_channels,), jnp.float32),
    }
    # TODO(synk): with_out=True / ConvModule(norm+act) projections and
    # query/key downsample modules are not instantiated; this covers the plain
    # nn.Conv2d projection path of the module.

    ref = _reference(query_feats, key_feats, value_feats, params,
                     channels=channels, matmul_norm=True)

    # Default path: auto tiles -> single-pass softmax (tk == Nk), grid (B, 1).
    out1 = self_attention_block(query_feats, key_feats, value_feats, params,
                                channels=channels, matmul_norm=True)
    out1 = jax.block_until_ready(out1)
    assert out1.shape == (B, out_channels, H, W), out1.shape
    # bf16 MXU operands + approx reciprocal -> relaxed tolerance vs f32 reference.
    assert jnp.allclose(out1, ref, atol=2e-2, rtol=2e-2), \
        float(jnp.max(jnp.abs(out1 - ref)))

    # Forced small tiles exercise the multi-tile online-softmax (flash) path,
    # grid = (2, 2, 2).
    out2 = self_attention_block(query_feats, key_feats, value_feats, params,
                                channels=channels, matmul_norm=True,
                                tq=128, tk=128)
    out2 = jax.block_until_ready(out2)
    assert out2.shape == (B, out_channels, H, W), out2.shape
    assert jnp.allclose(out2, ref, atol=2e-2, rtol=2e-2), \
        float(jnp.max(jnp.abs(out2 - ref)))

    print("KERNEL_OK")
</pallas_src>

<mosaic_0001>
module attributes {stable_mosaic.version = 11 : i64} {
  func.func @_attn_single_pass_kernel(%arg0: i32, %arg1: i32, %arg2: memref<1x32x256xbf16, #tpu.memory_space<vmem>>, %arg3: memref<1x65x256xbf16, #tpu.memory_space<vmem>>, %arg4: memref<1x32x256xf32, #tpu.memory_space<vmem>>) attributes {dimension_semantics = [#tpu.dimension_semantics<parallel>, #tpu.dimension_semantics<parallel>], iteration_bounds = array<i64: 2, 1>, scalar_prefetch = 0 : i64, scratch_operands = 0 : i64, tpu.core_type = #tpu.core_type<tc>, window_params = [{transform_indices = @transform_0, window_bounds = array<i64: 1, 32, 256>}, {transform_indices = @transform_1, window_bounds = array<i64: 1, 65, 256>}, {transform_indices = @transform_2, window_bounds = array<i64: 1, 32, 256>}]} {
    %c0 = arith.constant 0 : index
    %c0_0 = arith.constant 0 : index
    %c0_1 = arith.constant 0 : index
    %0 = vector.load %arg2[%c0, %c0_0, %c0_1] : memref<1x32x256xbf16, #tpu.memory_space<vmem>>, vector<1x32x256xbf16>
    %1 = vector.shape_cast %0 : vector<1x32x256xbf16> to vector<32x256xbf16>
    %c0_2 = arith.constant 0 : index
    %c0_3 = arith.constant 0 : index
    %c0_4 = arith.constant 0 : index
    %2 = vector.load %arg3[%c0_2, %c0_3, %c0_4] : memref<1x65x256xbf16, #tpu.memory_space<vmem>>, vector<1x65x256xbf16>
    %3 = vector.shape_cast %2 : vector<1x65x256xbf16> to vector<65x256xbf16>
    %4 = vector.extract_strided_slice %3 {offsets = [0, 0], sizes = [32, 256], strides = [1, 1]} : vector<65x256xbf16> to vector<32x256xbf16>
    %5 = vector.extract_strided_slice %3 {offsets = [32, 0], sizes = [33, 256], strides = [1, 1]} : vector<65x256xbf16> to vector<33x256xbf16>
    %cst = arith.constant dense<0.000000e+00> : vector<256x256xf32>
    %6 = tpu.matmul %4, %1, %cst {dimension_numbers = #tpu.dot_dimension_numbers<[0], [0], [1], [1], [0, 1, 1, 1], [], []>} : vector<32x256xbf16>, vector<32x256xbf16>, vector<256x256xf32> -> vector<256x256xf32>
    %cst_5 = arith.constant dense<0xFF800000> : vector<256xf32>
    %7 = vector.multi_reduction <maximumf>, %6, %cst_5 [0] : vector<256x256xf32> to vector<256xf32>
    %8 = vector.shape_cast %7 : vector<256xf32> to vector<1x256xf32>
    %9 = vector.broadcast %8 : vector<1x256xf32> to vector<256x256xf32>
    %10 = arith.subf %6, %9 : vector<256x256xf32>
    %11 = math.exp %10 : vector<256x256xf32>
    %12 = arith.truncf %11 : vector<256x256xf32> to vector<256x256xbf16>
    %cst_6 = arith.constant dense<0.000000e+00> : vector<33x256xf32>
    %13 = tpu.matmul %5, %12, %cst_6 {dimension_numbers = #tpu.dot_dimension_numbers<[1], [0], [0], [1], [0, 0, 1, 1], [], []>} : vector<33x256xbf16>, vector<256x256xbf16>, vector<33x256xf32> -> vector<33x256xf32>
    %14 = vector.extract_strided_slice %13 {offsets = [32, 0], sizes = [1, 256], strides = [1, 1]} : vector<33x256xf32> to vector<1x256xf32>
    %15 = tpu.reciprocal %14 {approx = true} : vector<1x256xf32> -> vector<1x256xf32>
    %16 = vector.extract_strided_slice %13 {offsets = [0, 0], sizes = [32, 256], strides = [1, 1]} : vector<33x256xf32> to vector<32x256xf32>
    %17 = vector.broadcast %15 : vector<1x256xf32> to vector<32x256xf32>
    %18 = arith.mulf %16, %17 : vector<32x256xf32>
    %c0_7 = arith.constant 0 : index
    %c0_8 = arith.constant 0 : index
    %c0_9 = arith.constant 0 : index
    %19 = vector.load %arg4[%c0_7, %c0_8, %c0_9] : memref<1x32x256xf32, #tpu.memory_space<vmem>>, vector<1x32x256xf32>
    %20 = vector.shape_cast %19 : vector<1x32x256xf32> to vector<32x256xf32>
    %21 = vector.shape_cast %18 : vector<32x256xf32> to vector<1x32x256xf32>
    tpu.vector_store %arg4[%c0_7, %c0_8, %c0_9], %21 {strides = array<i32>} : memref<1x32x256xf32, #tpu.memory_space<vmem>>, vector<1x32x256xf32>,
    return
  }
  func.func @transform_0(%arg0: i32, %arg1: i32) -> (i32, i32, i32) {
    %c0_i32 = arith.constant 0 : i32
    %c0_i32_0 = arith.constant 0 : i32
    return %arg0, %c0_i32, %arg1 : i32, i32, i32
  }
  func.func @transform_1(%arg0: i32, %arg1: i32) -> (i32, i32, i32) {
    %c0_i32 = arith.constant 0 : i32
    %c0_i32_0 = arith.constant 0 : i32
    %c0_i32_1 = arith.constant 0 : i32
    return %arg0, %c0_i32, %c0_i32_0 : i32, i32, i32
  }
  func.func @transform_2(%arg0: i32, %arg1: i32) -> (i32, i32, i32) {
    %c0_i32 = arith.constant 0 : i32
    %c0_i32_0 = arith.constant 0 : i32
    return %arg0, %c0_i32, %arg1 : i32, i32, i32
  }
}

</mosaic_0001>

<bundles_post_ra>
// kernel: tpu_custom_call.1
= control target key start
LH: loop header
LB: loop body
LE: loop exit
PB: predicated region body
PF: predicated region fallthrough
CT: control target
= control target key end

     0   :  { %7 = vsyncpa [#allocation3], 0  ;;  %s1956_s0 = inlined_call_operand.vmem [shape: bf16[2,32,256], index: 0, kind: input, shape index: {}]   ;;  %s1957_s1 = inlined_call_operand.vmem [shape: bf16[2,65,256], index: 1, kind: input, shape index: {}]   ;;  %s1958_s2 = inlined_call_operand.hbm [shape: f32[2,32,256], index: 2, kind: output, shape index: {}]  }
   0x1   :  { %9 = vsyncpa [#allocation3 + $0x1], 0  ;;  %s1444_s9 = smov 0   ;;  %s1446_s10 = smov 0  }
   0x2   :  { %s1448_s11 = smov 0   ;;  %s1450_s12 = smov 0  }
   0x3   :  { %s1452_s13 = smov 0   ;;  %s1454_s14 = smov 0  }
   0x4 LB: > { %s1044_s15 = sadd.s32 4294967295, %s1425_s14   ;;  %s1045_s16 = sadd.s32 4294967294, %s1425_s14   ;;  %s1425_s14 = sphi %s1454_s14, %s15_s14   ;;  %s1421_s13 = sphi %s1452_s13, %s2016_s13   ;;  %s1417_s12 = sphi %s1450_s12, %s2015_s12   ;;  %s1413_s11 = sphi %s1448_s11, %s2014_s11   ;;  %s1409_s10 = sphi %s1446_s10, %s2013_s10   ;;  %s1405_s9 = sphi %s1444_s9, %s2012_s9  }
   0x5   : > { %s27_s17 = sadd.s32 1, %s1421_s13  ;;  %s90_s18 = sadd.s32 1, %s1413_s11 }
   0x6   : > { %p29_p0 = scmp.ge.s32.totalorder %s27_s17, 2  ;;  %p100_p1 = scmp.ne.s32.totalorder %s1413_s11, %s1409_s10 }
   0x7   : > { %p101_p2 = scmp.eq.s32.totalorder %s1044_s15, 1  ;;  %p106_p3 = scmp.ne.s32.totalorder %s1409_s10, %s1405_s9 }
   0x8   : > { %s2018_s17 = smov (%p29_p0, %s27_s17), 0  ;;  %p107_p5 = scmp.eq.s32.totalorder %s1045_s16, 1 }
   0x9   : > { %p1484_p4 = por %p101_p2, %p100_p1  ;;  %s85_s20 = ssub.s32 %s1421_s13, %s2018_s17 }
   0xa   : > { %p1048_p6 = scmp.ge.s32.totalorder %s1425_s14, 1  ;;  %p88_p7 = scmp.eq.s32.totalorder %s85_s20, 0 }
   0xb   : > { %p1491_p8 = por %p107_p5, %p106_p3  ;;  %p146_p9 = scmp.lt.s32.totalorder %s1425_s14, 3 }
   0xc   : > { %s1497_s22 = scalar_select %p88_p7, %s1413_s11, %s90_s18  }
   0xd   : > { %p147_p10 = pnand %p1048_p6, %p146_p9 }
   0xf   : > { %150 = sbr.rel (%p147_p10) target bundleno = 829 (0x33d), region = 28 }
  0x14   : > { %p178_p11 = scmp.lt.s32.totalorder %s1417_s12, 1  ;;  %vm271_vm0 = vcmask 261120   ;;  %s174_s4 = sand.u32 1, %s1409_s10  }
  0x15   : > { %s1049_s5 = sshll.u32 %s174_s4, 6  ;;  %s1151_s7 = sshll.u32 %s1417_s12, 6 }
  0x16   : > { %s179_s23 = scalar_select %p178_p11, %s1417_s12, 1 }
  0x17   : > { %s1907_s6 = scalar_lea.vmem [#allocation2], %s1049_s5  ;;  %s949_s16 = scalar_lea.hbm %s1958_s2, %s1151_s7 }
  0x18   : > { %s1156_s24 = smul.u32 72, %s179_s23  ;;  %s1138_s25 = sshll.u32 %s179_s23, 5 }
  0x19   : > { %s185_s28 = scalar_lea.vmem %s1956_s0, %s1138_s25  ;;  %s950_s18 = sshll.u32 %s1907_s6, 4  ;;  %s951_s18 = int_to_ptr.vmem [resolvable:$true] %s950_s18 }
  0x1a   : > { %s1507_s3 = scalar_lea.vmem %s1957_s1, %s1156_s24  ;;  %v1079_v0 = vld [vmem:[%s185_s28 + $0x10] sm:$0xf]  ;;  %v1142_v1 = vld [vmem:[%s185_s28 + $0x14] sm:$0xf0]  ;;  %v1141_v2 = vld [vmem:[%s185_s28 + $0x14] sm:$0xf] }
  0x1b   : > { %v1143_v3 = vld [vmem:[%s1507_s3 + $0x4] sm:$0xf]  ;;  %v1055_v4 = vld [vmem:[%s1507_s3] sm:$0xf]  ;;  %v1057_v5 = vld [vmem:[%s1507_s3 + $0x8] sm:$0xf0]  ;;  %v1080_v6 = vor.u32 %v1142_v1, %v1079_v0 }
  0x1c   : > { %v1144_v7 = vld [vmem:[%s1507_s3 + $0x4] sm:$0xf0]  ;;  %v1060_v8 = vor.u32 %v1143_v3, %v1057_v5  ;;  %v1081_v10 = vld [vmem:[%s185_s28 + $0x18] sm:$0xf0]  ;;  %v1071_v12 = vld [vmem:[%s185_s28] sm:$0xf] }
  0x1d   : > { %v1056_v9 = vor.u32 %v1144_v7, %v1055_v4  ;;  %326 = vmatpush.bf16.msra.mxu0 %v1080_v6  ;;  %1152 = vmatpush.bf16.msra.mxu2 %v1080_v6  ;;  %v1084_v11 = vor.u32 %v1141_v2, %v1081_v10  ;;  %v1140_v13 = vld [vmem:[%s185_s28 + $0x4] sm:$0xf0]  ;;  %v1139_v14 = vld [vmem:[%s185_s28 + $0x4] sm:$0xf]  ;;  %v1073_v16 = vld [vmem:[%s185_s28 + $0x8] sm:$0xf0] }
  0x1e   : > { %v1072_v15 = vor.u32 %v1140_v13, %v1071_v12  ;;  %v1076_v17 = vor.u32 %v1139_v14, %v1073_v16  ;;  %v1145_v18 = vld [vmem:[%s1507_s3 + $0x14] sm:$0xf]  ;;  %v1063_v19 = vld [vmem:[%s1507_s3 + $0x10] sm:$0xf]  ;;  %v1065_v20 = vld [vmem:[%s1507_s3 + $0x18] sm:$0xf0] }
  0x1f   : > { %227 = vxpose.binary.xlu0.c.b16.start [1/4] (short) %v1060_v8, %v1056_v9, 128  ;;  %v1146_v21 = vld [vmem:[%s1507_s3 + $0x14] sm:$0xf0]  ;;  %v1068_v23 = vor.u32 %v1145_v18, %v1065_v20  ;;  %s952_s20 = sshll.u32 %s949_s16, 4  ;;  %s936_s12 = scalar_lea.sflag [#allocation3], %s174_s4  ;;  %s953_s20 = int_to_ptr.hbm [resolvable:$true] %s952_s20 }
  0x20   : > { %415 = vmatpush.bf16.msra.mxu1 %v1084_v11  ;;  %1154 = vmatpush.bf16.msra.mxu3 %v1084_v11  ;;  %v1064_v22 = vor.u32 %v1146_v21, %v1063_v19  ;;  %s1361_s23 = sshra.s32 %s953_s20, 4  ;;  %s1367_s27 = scalar_lea.hbm %s1958_s2, 128  ;;  %s1362_s23 = int_to_ptr.hbm [resolvable:$true] %s1361_s23 }
  0x21   : > { %327 = vmatpush.bf16.msra.mxu0 %v1072_v15  ;;  %1153 = vmatpush.bf16.msra.mxu2 %v1072_v15  ;;  %s1363_s24 = scalar_lea.hbm %s1362_s23, 64  ;;  %p1368_p1 = scmp.lt.s32.totalorder %s1362_s23, %s1958_s2 }
  0x22   : > { %p1364_p12 = scmp.ne.s32.totalorder %s1362_s23, %s1363_s24  ;;  %p1369_p2 = scmp.lt.s32.totalorder %s1367_s27, %s1363_s24 }
  0x24   : > { %416 = vmatpush.bf16.msra.mxu1 %v1076_v17  ;;  %1155 = vmatpush.bf16.msra.mxu3 %v1076_v17  ;;  %p1365_p13 = pnand %p1364_p12, %p1484_p4  ;;  %p1370_p3 = por %p1369_p2, %p1368_p1 }
  0x26   : > { %p1366_p0 = pneg %p1365_p13 }
  0x28   : > { %p1371_p5 = pnand %p1370_p3, %p1366_p0 }
  0x2f   : > { %228 = vxpose.binary.xlu0.c.b16.end [2/4] (short) %v1068_v23, %v1064_v22, 128 }
  0xcb   : > { %v235_v24 = vpop.trf.xlu0 }
  0xcc   : > { %1085 = vmatmul.msk.bf16.vlgmr.msra.gmra.mxu0 %vm271_vm0, %v235_v24  ;;  %1101 = vmatmul.msk.bf16.vlgmr.msra.gmra.mxu1 %vm271_vm0, %v235_v24 }
  0xd3   : > { %v236_v25 = vpop.trf.xlu0 }
  0xdb   : > { %v237_v26 = vpop.trf.xlu0 }
  0xdc   : > { %1086 = vmatmul.msk.bf16.gmra.mxu0 %vm271_vm0, %v237_v26  ;;  %1102 = vmatmul.msk.bf16.gmra.mxu1 %vm271_vm0, %v237_v26 }
  0xe3   : > { %v238_v27 = vpop.trf.xlu0 }
  0xeb   : > { %v239_v28 = vpop.trf.xlu0 }
  0xec   : > { %1087 = vmatmul.msk.bf16.gmra.mxu0 %vm271_vm0, %v239_v28  ;;  %1103 = vmatmul.msk.bf16.gmra.mxu1 %vm271_vm0, %v239_v28 }
  0xf3   : > { %v240_v29 = vpop.trf.xlu0 }
  0xfb   : > { %v241_v30 = vpop.trf.xlu0 }
  0xfc   : > { %1088 = vmatmul.msk.bf16.gmra.mxu0 %vm271_vm0, %v241_v30  ;;  %1104 = vmatmul.msk.bf16.gmra.mxu1 %vm271_vm0, %v241_v30 }
 0x103   : > { %v242_v31 = vpop.trf.xlu0 }
 0x104   : > { %1112 = vmatmul.msk.bf16.vlgmr.msra.gmra.mxu3 %vm271_vm0, %v242_v31 }
 0x10b   : > { %v243_v32 = vpop.trf.xlu0 }
 0x10c   : > { %1089 = vmatmul.msk.bf16.gmra.mxu0 %vm271_vm0, %v243_v32  ;;  %1105 = vmatmul.msk.bf16.gmra.mxu1 %vm271_vm0, %v243_v32 }
 0x113   : > { %v244_v33 = vpop.trf.xlu0 }
 0x114   : > { %1097 = vmatmul.msk.bf16.vlgmr.msra.gmra.mxu2 %vm271_vm0, %v244_v33  ;;  %1113 = vmatmul.msk.bf16.gmra.mxu3 %vm271_vm0, %v244_v33 }
 0x11b   : > { %v245_v34 = vpop.trf.xlu0 }
 0x11c   : > { %1090 = vmatmul.msk.bf16.gmra.mxu0 %vm271_vm0, %v245_v34  ;;  %1106 = vmatmul.msk.bf16.gmra.mxu1 %vm271_vm0, %v245_v34 }
 0x123   : > { %v246_v35 = vpop.trf.xlu0 }
 0x124   : > { %1098 = vmatmul.msk.bf16.gmra.mxu2 %vm271_vm0, %v246_v35  ;;  %1114 = vmatmul.msk.bf16.gmra.mxu3 %vm271_vm0, %v246_v35 }
 0x12b   : > { %v247_v36 = vpop.trf.xlu0 }
 0x12c   : > { %1091 = vmatmul.msk.bf16.gmra.mxu0 %vm271_vm0, %v247_v36  ;;  %1107 = vmatmul.msk.bf16.gmra.mxu1 %vm271_vm0, %v247_v36 }
 0x133   : > { %v248_v37 = vpop.trf.xlu0 }
 0x134   : > { %1099 = vmatmul.msk.bf16.gmra.mxu2 %vm271_vm0, %v248_v37  ;;  %1115 = vmatmul.msk.bf16.gmra.mxu3 %vm271_vm0, %v248_v37 }
 0x13b   : > { %v249_v38 = vpop.trf.xlu0 }
 0x13c   : > { %1092 = vmatmul.msk.bf16.gmra.mxu0 %vm271_vm0, %v249_v38  ;;  %1108 = vmatmul.msk.bf16.gmra.mxu1 %vm271_vm0, %v249_v38 }
 0x143   : > { %v250_v41 = vpop.trf.xlu0 }
 0x144   : > { %1116 = vmatmul.msk.bf16.gmra.mxu3 %vm271_vm0, %v250_v41  ;;  %1100 = vmatmul.msk.bf16.gmra.mxu2 %vm271_vm0, %v250_v41 }
 0x149   : > { %v1540_v39 = vpop.f32.mrf.mxu0  ;;  %v1542_v40 = vpop.f32.mrf.mxu1 }
 0x14a   : > { %1978 = vst [vmem:[#allocation5_spill] sm:$0xff] %v1542_v40 }
 0x14c   : > { %1093 = vmatmul.msk.bf16.gmra.mxu0 %vm271_vm0, %v236_v25  ;;  %1109 = vmatmul.msk.bf16.gmra.mxu1 %vm271_vm0, %v236_v25 }
 0x151   : > { %v1548_v42 = vpop.f32.mrf.mxu0  ;;  %v1550_v43 = vpop.f32.mrf.mxu1 }
 0x152   : > { %1979 = vst [vmem:[#allocation6_spill] sm:$0xff] %v1550_v43 }
 0x159   : > { %v1552_v44 = vpop.f32.mrf.mxu0  ;;  %v1554_v45 = vpop.f32.mrf.mxu1 }
 0x15a   : > { %1980 = vst [vmem:[#allocation7_spill] sm:$0xff] %v1554_v45  ;;  %v535_v25 = vmax.f32 %v1542_v40, %v1554_v45 }
 0x15c   : > { %1094 = vmatmul.msk.bf16.gmra.mxu0 %vm271_vm0, %v238_v27  ;;  %1110 = vmatmul.msk.bf16.gmra.mxu1 %vm271_vm0, %v238_v27 }
 0x161   : > { %v1558_v46 = vpop.f32.mrf.mxu0  ;;  %v1560_v47 = vpop.f32.mrf.mxu1 }
 0x162   : > { %1981 = vst [vmem:[#allocation8_spill] sm:$0xff] %v1560_v47  ;;  %v536_v22 = vmax.f32 %v1550_v43, %v1560_v47 }
 0x169   : > { %v1562_v48 = vpop.f32.mrf.mxu0  ;;  %v1564_v49 = vpop.f32.mrf.mxu1 }
 0x16a   : > { %v537_v27 = vmax.f32 %v535_v25, %v1564_v49 }
 0x16c   : > { %1095 = vmatmul.msk.bf16.gmra.mxu0 %vm271_vm0, %v240_v29  ;;  %1111 = vmatmul.msk.bf16.gmra.mxu1 %vm271_vm0, %v240_v29 }
 0x171   : > { %v1568_v50 = vpop.f32.mrf.mxu0  ;;  %v1570_v51 = vpop.f32.mrf.mxu1 }
 0x172   : > { %1982 = vst [vmem:[#allocation9_spill] sm:$0xff] %v1570_v51  ;;  %v538_v26 = vmax.f32 %v536_v22, %v1570_v51 }
 0x179   : > { %v1572_v52 = vpop.f32.mrf.mxu0  ;;  %v1574_v53 = vpop.f32.mrf.mxu1 }
 0x17a   : > { %v539_v30 = vmax.f32 %v537_v27, %v1574_v53 }
 0x17c   : > { %1096 = vmatmul.msk.bf16.gmra.mxu0 %vm271_vm0, %v242_v31 }
 0x181   : > { %v1577_v54 = vpop.f32.mrf.mxu0  ;;  %v1579_v55 = vpop.f32.mrf.mxu1 }
 0x182   : > { %v540_v28 = vmax.f32 %v538_v26, %v1579_v55 }
 0x187   : > { %v1605_v4 = vpop.f32.mrf.mxu3 }
 0x188   : > { %1983 = vst [vmem:[#allocation10_spill] sm:$0xff] %v1605_v4 }
 0x189   : > { %v1581_v56 = vpop.f32.mrf.mxu0  ;;  %v1583_v57 = vpop.f32.mrf.mxu1 }
 0x18a   : > { %v541_v33 = vmax.f32 %v539_v30, %v1583_v57 }
 0x18f   : > { %v1611_v7 = vpop.f32.mrf.mxu3 }
 0x190   : > { %1984 = vst [vmem:[#allocation11_spill] sm:$0xff] %v1611_v7 }
 0x191   : > { %v1585_v58 = vpop.f32.mrf.mxu0  ;;  %v1587_v59 = vpop.f32.mrf.mxu1 }
 0x192   : > { %v542_v31 = vmax.f32 %v540_v28, %v1587_v59 }
 0x197   : > { %v1617_v10 = vpop.f32.mrf.mxu3  ;;  %v1633_v18 = vpop.f32.mrf.mxu2 }
 0x198   : > { %1985 = vst [vmem:[#allocation12_spill] sm:$0xff] %v1617_v10 }
 0x199   : > { %v1589_v60 = vpop.f32.mrf.mxu0  ;;  %v1591_v61 = vpop.f32.mrf.mxu1 }
 0x19a   : > { %v543_v35 = vmax.f32 %v541_v33, %v1591_v61 }
 0x19f   : > { %v1623_v13 = vpop.f32.mrf.mxu3  ;;  %v1643_v23 = vpop.f32.mrf.mxu2 }
 0x1a0   : > { %1987 = vst [vmem:[#allocation14_spill] sm:$0xff] %v1623_v13 }
 0x1a1   : > { %v1593_v62 = vpop.f32.mrf.mxu0  ;;  %v1595_v63 = vpop.f32.mrf.mxu1 }
 0x1a2   : > { %v544_v34 = vmax.f32 %v542_v31, %v1595_v63 }
 0x1a7   : > { %v1631_v17 = vpop.f32.mrf.mxu3  ;;  %v1661_v36 = vpop.f32.mrf.mxu2 }
 0x1a8   : > { %1989 = vst [vmem:[#allocation16_spill] sm:$0xff] %v1631_v17 }
 0x1a9   : > { %v1597_v0 = vpop.f32.mrf.mxu0  ;;  %v1599_v1 = vpop.f32.mrf.mxu1 }
 0x1aa   : > { %v545_v41 = vmax.f32 %v543_v35, %v1599_v1 }
 0x1af   : > { %v1639_v21 = vpop.f32.mrf.mxu3  ;;  %v1678_v43 = vpop.f32.mrf.mxu2 }
 0x1b0   : > { %1990 = vst [vmem:[#allocation17_spill] sm:$0xff] %v1639_v21 }
 0x1b1   : > { %v1601_v2 = vpop.f32.mrf.mxu0  ;;  %v1603_v3 = vpop.f32.mrf.mxu1 }
 0x1b2   : > { %v546_v37 = vmax.f32 %v544_v34, %v1603_v3 }
 0x1b7   : > { %v1656_v32 = vpop.f32.mrf.mxu3 }
 0x1b8   : > { %1992 = vst [vmem:[#allocation19_spill] sm:$0xff] %v1656_v32 }
 0x1b9   : > { %v1607_v5 = vpop.f32.mrf.mxu0  ;;  %v1609_v6 = vpop.f32.mrf.mxu1 }
 0x1ba   : > { %v547_v25 = vmax.f32 %v545_v41, %v1609_v6 }
 0x1bf   : > { %v1674_v31 = vpop.f32.mrf.mxu3 }
 0x1c0   : > { %1994 = vst [vmem:[#allocation21_spill] sm:$0xff] %v1674_v31 }
 0x1c1   : > { %v1613_v8 = vpop.f32.mrf.mxu0  ;;  %v1615_v9 = vpop.f32.mrf.mxu1 }
 0x1c2   : > { %v548_v22 = vmax.f32 %v546_v37, %v1615_v9 }
 0x1c9   : > { %v1619_v11 = vpop.f32.mrf.mxu1  ;;  %v1621_v12 = vpop.f32.mrf.mxu0 }
 0x1ca   : > { %1986 = vst [vmem:[#allocation13_spill] sm:$0xff] %v1619_v11  ;;  %v549_v28 = vmax.f32 %v547_v25, %v1619_v11 }
 0x1d1   : > { %v1625_v14 = vpop.f32.mrf.mxu1  ;;  %v1627_v15 = vpop.f32.mrf.mxu0 }
 0x1d2   : > { %1988 = vst [vmem:[#allocation15_spill] sm:$0xff] %v1625_v14  ;;  %v550_v26 = vmax.f32 %v548_v22, %v1625_v14  ;;  %v499_v22 = vmax.f32 %v1548_v42, %v1558_v46  ;;  %v1690_v14 = vpop.f32.mrf.mxu3 }
 0x1d9   : > { %v1629_v16 = vpop.f32.mrf.mxu1  ;;  %v1635_v19 = vpop.f32.mrf.mxu0 }
 0x1da   : > { %v551_v33 = vmax.f32 %v549_v28, %v1629_v16  ;;  %v501_v28 = vmax.f32 %v499_v22, %v1568_v50 }
 0x1dc   : > { %v503_v11 = vmax.f32 %v501_v28, %v1577_v54 }
 0x1e1   : > { %v1637_v20 = vpop.f32.mrf.mxu1  ;;  %v1645_v24 = vpop.f32.mrf.mxu0 }
 0x1e2   : > { %v552_v30 = vmax.f32 %v550_v26, %v1637_v20  ;;  %v498_v26 = vmax.f32 %v1540_v39, %v1552_v44 }
 0x1e9   : > { %v1652_v29 = vpop.f32.mrf.mxu1  ;;  %v1664_v38 = vpop.f32.mrf.mxu0 }
 0x1ea   : > { %1991 = vst [vmem:[#allocation18_spill] sm:$0xff] %v1652_v29  ;;  %v553_v35 = vmax.f32 %v551_v33, %v1652_v29  ;;  %v500_v33 = vmax.f32 %v498_v26, %v1562_v48  ;;  %v505_v29 = vmax.f32 %v503_v11, %v1585_v58 }
 0x1ec   : > { %v555_v25 = vmax.f32 %v553_v35, %v1605_v4  ;;  %v1698_v35 = vpop.f32.mrf.mxu2 }
 0x1f1   : > { %v1670_v27 = vpop.f32.mrf.mxu1  ;;  %v1681_v37 = vpop.f32.mrf.mxu0 }
 0x1f2   : > { %1993 = vst [vmem:[#allocation20_spill] sm:$0xff] %v1670_v27  ;;  %v554_v34 = vmax.f32 %v552_v30, %v1670_v27  ;;  %v502_v27 = vmax.f32 %v500_v33, %v1572_v52 }
 0x1f4   : > { %v556_v41 = vmax.f32 %v554_v34, %v1611_v7  ;;  %v557_v34 = vmax.f32 %v555_v25, %v1617_v10  ;;  %v504_v4 = vmax.f32 %v502_v27, %v1581_v56  ;;  %v495_v10 = vpop.f32.mrf.mxu3  ;;  %v1716_v47 = vpop.f32.mrf.mxu2 }
 0x1f6   : > { %v558_v30 = vmax.f32 %v556_v41, %v1623_v13  ;;  %v507_v41 = vmax.f32 %v505_v29, %v1593_v62  ;;  %v559_v26 = vmax.f32 %v557_v34, %v1631_v17  ;;  %v506_v28 = vmax.f32 %v504_v4, %v1589_v60 }
 0x1f8   : > { %v560_v22 = vmax.f32 %v558_v30, %v1639_v21  ;;  %v509_v25 = vmax.f32 %v507_v41, %v1601_v2  ;;  %v508_v11 = vmax.f32 %v506_v28, %v1597_v0  ;;  %v561_v40 = vmax.f32 %v559_v26, %v1656_v32 }
 0x1f9   : > { %v1700_v7 = vpop.f32.mrf.mxu0 }
 0x1fa   : > { %v562_v33 = vmax.f32 %v560_v22, %v1674_v31  ;;  %v511_v13 = vmax.f32 %v509_v25, %v1613_v8  ;;  %v510_v30 = vmax.f32 %v508_v11, %v1607_v5  ;;  %v563_v22 = vmax.f32 %v561_v40, %v1690_v14 }
 0x1fc   : > { %v513_v27 = vmax.f32 %v511_v13, %v1627_v15  ;;  %v564_v29 = vmax.f32 %v562_v33, %v495_v10  ;;  %v512_v34 = vmax.f32 %v510_v30, %v1621_v12  ;;  %v1727_v21 = vpop.f32.mrf.mxu2 }
 0x1fe   : > { %v515_v4 = vmax.f32 %v513_v27, %v1645_v24  ;;  %v514_v28 = vmax.f32 %v512_v34, %v1635_v19  ;;  %v565_v26 = vmax.f32 %v563_v22, %v564_v29 }
 0x200   : > { %v517_v25 = vmax.f32 %v515_v4, %v1681_v37  ;;  %v516_v11 = vmax.f32 %v514_v28, %v1664_v38  ;;  %v566_v30 = vrot.slane %v565_v26, 4 }
 0x201   : > { %v1719_v41 = vpop.f32.mrf.mxu0 }
 0x202   : > { %v519_v13 = vmax.f32 %v517_v25, %v1719_v41  ;;  %v518_v33 = vmax.f32 %v516_v11, %v1700_v7  ;;  %v567_v17 = vmax.f32 %v565_v26, %v566_v30 }
 0x204   : > { %v521_v27 = vmax.f32 %v519_v13, %v1643_v23  ;;  %v520_v40 = vmax.f32 %v518_v33, %v1633_v18  ;;  %v568_v4 = vrot.slane %v567_v17, 2  ;;  %v406_v25 = vpop.f32.mrf.mxu2 }
 0x206   : > { %v523_v45 = vmax.f32 %v521_v27, %v1678_v43  ;;  %v522_v34 = vmax.f32 %v520_v40, %v1661_v36  ;;  %v569_v28 = vmax.f32 %v567_v17, %v568_v4 }
 0x208   : > { %v525_v29 = vmax.f32 %v523_v45, %v1716_v47  ;;  %v524_v22 = vmax.f32 %v522_v34, %v1698_v35  ;;  %v570_v13 = vrot.slane %v569_v28, 1 }
 0x20a   : > { %v527_v11 = vmax.f32 %v525_v29, %v406_v25  ;;  %v526_v51 = vmax.f32 %v524_v22, %v1727_v21  ;;  %v1735_v32 = vmax.f32 %v569_v28, %v570_v13 }
 0x20c   : > { %v528_v31 = vmax.f32 %v526_v51, %v527_v11  ;;  %v609_v26 = vsub.f32 %v1629_v16, %v1735_v32  ;;  %v611_v30 = vsub.f32 %v1637_v20, %v1735_v32 }
 0x20e   : > { %v529_v33 = vrot.slane %v528_v31, 4  ;;  %v710_v45 = vmul.f32 1.442695, %v609_v26  ;;  %v714_v40 = vmul.f32 1.442695, %v611_v30 }
 0x210   : > { %v530_v27 = vmax.f32 %v528_v31, %v529_v33  ;;  %1215 = vpow2.f32 %v710_v45  ;;  %v635_v33 = vsub.f32 %v495_v10, %v1735_v32 }
 0x211   : > { %1217 = vpow2.f32 %v714_v40 }
 0x212   : > { %v531_v34 = vrot.slane %v530_v27, 2 }
 0x214   : > { %v532_v17 = vmax.f32 %v530_v27, %v531_v34 }
 0x216   : > { %v533_v4 = vrot.slane %v532_v17, 1  ;;  %v1741_v29 = vpop.eup %1215 }
 0x217   : > { %v1743_v51 = vpop.eup %1217 }
 0x218   : > { %v1745_v22 = vmax.f32 %v532_v17, %v533_v4  ;;  %v783_v16 = vpack.c.bf16 %v1743_v51, %v1741_v29 }
 0x21a   : > { %v600_v20 = vsub.f32 %v1607_v5, %v1745_v22  ;;  %v602_v31 = vsub.f32 %v1613_v8, %v1745_v22  ;;  %v596_v28 = vsub.f32 %v1597_v0, %v1745_v22  ;;  %v598_v11 = vsub.f32 %v1601_v2, %v1745_v22 }
 0x21b   : > { %v592_v30 = vsub.f32 %v1589_v60, %v1745_v22  ;;  %v594_v5 = vsub.f32 %v1593_v62, %v1745_v22  ;;  %v585_v8 = vsub.f32 %v1574_v53, %v1735_v32  ;;  %v762_v0 = vmul.f32 1.442695, %v635_v33 }
 0x21c   : > { %v692_v13 = vmul.f32 1.442695, %v600_v20  ;;  %v696_v26 = vmul.f32 1.442695, %v602_v31  ;;  %v684_v27 = vmul.f32 1.442695, %v596_v28  ;;  %v601_v2 = vsub.f32 %v1609_v6, %v1735_v32 }
 0x21d   : > { %v688_v45 = vmul.f32 1.442695, %v598_v11  ;;  %v588_v10 = vsub.f32 %v1581_v56, %v1745_v22  ;;  %v676_v40 = vmul.f32 1.442695, %v592_v30  ;;  %v590_v60 = vsub.f32 %v1585_v58, %v1745_v22 }
 0x21e   : > { %1219 = vpow2.f32 %v692_v13  ;;  %v680_v34 = vmul.f32 1.442695, %v594_v5  ;;  %v662_v62 = vmul.f32 1.442695, %v585_v8  ;;  %v634_v17 = vsub.f32 %v406_v25, %v1745_v22 }
 0x21f   : > { %1221 = vpow2.f32 %v696_v26  ;;  %v694_v53 = vmul.f32 1.442695, %v601_v2  ;;  %v580_v4 = vsub.f32 %v1562_v48, %v1745_v22  ;;  %v584_v20 = vsub.f32 %v1572_v52, %v1745_v22 }
 0x220   : > { %1223 = vpow2.f32 %v684_v27  ;;  %v668_v56 = vmul.f32 1.442695, %v588_v10  ;;  %v586_v58 = vsub.f32 %v1577_v54, %v1745_v22  ;;  %v672_v28 = vmul.f32 1.442695, %v590_v60 }
 0x221   : > { %1225 = vpow2.f32 %v688_v45  ;;  %v760_v13 = vmul.f32 1.442695, %v634_v17  ;;  %v632_v25 = vsub.f32 %v1727_v21, %v1745_v22  ;;  %v628_v26 = vsub.f32 %v1698_v35, %v1745_v22 }
 0x222   : > { %1227 = vpow2.f32 %v762_v0  ;;  %v652_v52 = vmul.f32 1.442695, %v580_v4  ;;  %v630_v30 = vsub.f32 %v1716_v47, %v1745_v22  ;;  %v660_v27 = vmul.f32 1.442695, %v584_v20 }
 0x223   : > { %1229 = vpow2.f32 %v676_v40  ;;  %v582_v5 = vsub.f32 %v1568_v50, %v1745_v22  ;;  %v664_v21 = vmul.f32 1.442695, %v586_v58  ;;  %v576_v35 = vsub.f32 %v1552_v44, %v1745_v22 }
 0x224   : > { %v1220_v6 = vpop.eup %1219  ;;  %1231 = vpow2.f32 %v680_v34  ;;  %v756_v8 = vmul.f32 1.442695, %v632_v25  ;;  %v624_v47 = vsub.f32 %v1661_v36, %v1745_v22  ;;  %v748_v10 = vmul.f32 1.442695, %v628_v26 }
 0x225   : > { %v1222_v31 = vpop.eup %1221  ;;  %1233 = vpow2.f32 %v662_v62  ;;  %v626_v50 = vsub.f32 %v1678_v43, %v1745_v22  ;;  %v752_v60 = vmul.f32 1.442695, %v630_v30  ;;  %v578_v44 = vsub.f32 %v1558_v46, %v1745_v22 }
 0x226   : > { %v1224_v11 = vpop.eup %1223  ;;  %v778_v33 = vpack.c.bf16 %v1222_v31, %v1220_v6  ;;  %1235 = vpow2.f32 %v694_v53  ;;  %v656_v62 = vmul.f32 1.442695, %v582_v5  ;;  %v572_v36 = vsub.f32 %v1540_v39, %v1745_v22 }
 0x227   : > { %v1226_v48 = vpop.eup %1225  ;;  %1237 = vpow2.f32 %v668_v56  ;;  %v644_v53 = vmul.f32 1.442695, %v576_v35  ;;  %v620_v43 = vsub.f32 %v1633_v18, %v1745_v22  ;;  %v740_v20 = vmul.f32 1.442695, %v624_v47 }
 0x228   : > { %823 = vmatpush.bf16.msrb.mxu2 %v778_v33  ;;  %v1783_v54 = vpop.eup %1227  ;;  %1239 = vpow2.f32 %v672_v28  ;;  %v776_v0 = vpack.c.bf16 %v1226_v48, %v1224_v11  ;;  %v622_v31 = vsub.f32 %v1643_v23, %v1745_v22  ;;  %v744_v46 = vmul.f32 1.442695, %v626_v50 }
 0x229   : > { %v1230_v45 = vpop.eup %1229  ;;  %1241 = vpow2.f32 %v760_v13  ;;  %v574_v39 = vsub.f32 %v1548_v42, %v1745_v22  ;;  %v648_v28 = vmul.f32 1.442695, %v578_v44  ;;  %v603_v13 = vsub.f32 %v1615_v9, %v1735_v32 }
 0x22a   : > { %v1232_v2 = vpop.eup %1231  ;;  %1243 = vpow2.f32 %v652_v52  ;;  %v636_v18 = vmul.f32 1.442695, %v572_v36  ;;  %v616_v23 = vsub.f32 %v1700_v7, %v1745_v22  ;;  %v732_v48 = vmul.f32 1.442695, %v620_v43 }
 0x22b   : > { %v1791_v40 = vpop.eup %1233  ;;  %1245 = vpow2.f32 %v660_v27  ;;  %v774_v4 = vpack.c.bf16 %v1232_v2, %v1230_v45  ;;  %v618_v52 = vsub.f32 %v1719_v41, %v1745_v22  ;;  %v736_v42 = vmul.f32 1.442695, %v622_v31 }
 0x22c   : > { %824 = vmatpush.bf16.msrb.mxu2 %v776_v0  ;;  %v1795_v34 = vpop.eup %1235  ;;  %1247 = vpow2.f32 %v664_v21  ;;  %v597_v9 = vsub.f32 %v1599_v1, %v1735_v32  ;;  %v640_v27 = vmul.f32 1.442695, %v574_v39  ;;  %v599_v7 = vsub.f32 %v1603_v3, %v1735_v32 }
 0x22d   : > { %v1238_v17 = vpop.eup %1237  ;;  %1249 = vpow2.f32 %v756_v8  ;;  %v698_v45 = vmul.f32 1.442695, %v603_v13  ;;  %v612_v41 = vsub.f32 %v1664_v38, %v1745_v22  ;;  %v724_v0 = vmul.f32 1.442695, %v616_v23 }
 0x22e   : > { %v1240_v6 = vpop.eup %1239  ;;  %1251 = vpow2.f32 %v748_v10  ;;  %v614_v1 = vsub.f32 %v1681_v37, %v1745_v22  ;;  %v728_v47 = vmul.f32 1.442695, %v618_v52  ;;  %v593_v3 = vsub.f32 %v1591_v61, %v1735_v32 }
 0x22f   : > { %v1242_v56 = vpop.eup %1241  ;;  %1253 = vpow2.f32 %v752_v60  ;;  %v772_v25 = vpack.c.bf16 %v1240_v6, %v1238_v17  ;;  %v686_v50 = vmul.f32 1.442695, %v597_v9  ;;  %v595_v38 = vsub.f32 %v1595_v63, %v1735_v32 }
 0x230   : > { %825 = vmatpush.bf16.msrb.mxu2 %v774_v4  ;;  %v1244_v58 = vpop.eup %1243  ;;  %1255 = vpow2.f32 %v656_v62  ;;  %v690_v62 = vmul.f32 1.442695, %v599_v7  ;;  %v608_v37 = vsub.f32 %v1635_v19, %v1745_v22  ;;  %v610_v61 = vsub.f32 %v1645_v24, %v1745_v22 }
 0x231   : > { %v1246_v11 = vpop.eup %1245  ;;  %1257 = vpow2.f32 %v644_v53  ;;  %v716_v53 = vmul.f32 1.442695, %v612_v41  ;;  %v720_v6 = vmul.f32 1.442695, %v614_v1  ;;  %v589_v63 = vsub.f32 %v1583_v57, %v1735_v32 }
 0x232   : > { %v1248_v33 = vpop.eup %1247  ;;  %1259 = vpow2.f32 %v740_v20  ;;  %v678_v20 = vmul.f32 1.442695, %v593_v3  ;;  %v591_v19 = vsub.f32 %v1587_v59, %v1735_v32  ;;  %v604_v39 = vsub.f32 %v1621_v12, %v1745_v22  ;;  %v1119_v59 = vld [vmem:[%s1507_s3 + $0x20] sm:$0xf] }
 0x233   : > { %v1250_v26 = vpop.eup %1249  ;;  %1261 = vpow2.f32 %v744_v46  ;;  %v770_v35 = vpack.c.bf16 %v1248_v33, %v1246_v11  ;;  %v682_v46 = vmul.f32 1.442695, %v595_v38  ;;  %v581_v11 = vsub.f32 %v1564_v49, %v1735_v32 }
 0x234   : > { %826 = vmatpush.bf16.msrb.mxu2 %v772_v25  ;;  %v1252_v30 = vpop.eup %1251  ;;  %1263 = vpow2.f32 %v648_v28  ;;  %v794_v5 = vpack.c.bf16 %v1242_v56, %v1250_v26  ;;  %v708_v28 = vmul.f32 1.442695, %v608_v37  ;;  %v606_v13 = vsub.f32 %v1627_v15, %v1745_v22  ;;  %v1148_v25 = vld [vmem:[%s1507_s3 + $0x24] sm:$0xf0] }
 0x235   : > { %v1254_v21 = vpop.eup %1253  ;;  %1265 = vpow2.f32 %v636_v18  ;;  %v712_v18 = vmul.f32 1.442695, %v610_v61  ;;  %v633_v23 = vsub.f32 %v1690_v14, %v1735_v32  ;;  %v670_v12 = vmul.f32 1.442695, %v589_v63  ;;  %v1995_v14 = vld [vmem:[#allocation19_spill] sm:$0xff] }
 0x236   : > { %v1256_v8 = vpop.eup %1255  ;;  %1267 = vpow2.f32 %v732_v48  ;;  %846 = vmatpush.bf16.msrb.mxu3 %v794_v5  ;;  %v792_v60 = vpack.c.bf16 %v1254_v21, %v1252_v30  ;;  %v587_v52 = vsub.f32 %v1579_v55, %v1735_v32  ;;  %v674_v49 = vmul.f32 1.442695, %v591_v19  ;;  %v1996_v55 = vld [vmem:[#allocation21_spill] sm:$0xff] }
 0x237   : > { %v1258_v2 = vpop.eup %1257  ;;  %1269 = vpow2.f32 %v736_v42  ;;  %v768_v17 = vpack.c.bf16 %v1256_v8, %v1244_v58  ;;  %v700_v22 = vmul.f32 1.442695, %v604_v39  ;;  %v1846_v9 = vor.u32 %v1148_v25, %v1119_v59 }
 0x238   : > { %827 = vmatpush.bf16.msrb.mxu2 %v770_v35  ;;  %v1260_v10 = vpop.eup %1259  ;;  %1271 = vpow2.f32 %v640_v27  ;;  %v629_v5 = vsub.f32 %v1995_v14, %v1735_v32  ;;  %v704_v21 = vmul.f32 1.442695, %v606_v13  ;;  %v758_v35 = vmul.f32 1.442695, %v633_v23  ;;  %v1127_v14 = vld [vmem:[%s1507_s3 + $0x30] sm:$0xf] }
 0x239   : > { %v1262_v44 = vpop.eup %1261  ;;  %1273 = vpow2.f32 %v698_v45  ;;  %v631_v45 = vsub.f32 %v1996_v55, %v1735_v32  ;;  %v654_v3 = vmul.f32 1.442695, %v581_v11  ;;  %v2004_v11 = vld [vmem:[#allocation14_spill] sm:$0xff] }
 0x23a   : > { %v1264_v36 = vpop.eup %1263  ;;  %1275 = vpow2.f32 %v724_v0  ;;  %847 = vmatpush.bf16.msrb.mxu3 %v792_v60  ;;  %v790_v56 = vpack.c.bf16 %v1262_v44, %v1260_v10  ;;  %v1999_v44 = vld [vmem:[#allocation16_spill] sm:$0xff]  ;;  %v623_v13 = vsub.f32 %v2004_v11, %v1735_v32 }
 0x23b   : > { %v1266_v4 = vpop.eup %1265  ;;  %1277 = vpow2.f32 %v728_v47  ;;  %v766_v58 = vpack.c.bf16 %v1264_v36, %v1258_v2  ;;  %v666_v2 = vmul.f32 1.442695, %v587_v52  ;;  %v1998_v47 = vld [vmem:[#allocation7_spill] sm:$0xff]  ;;  %v625_v38 = vsub.f32 %v1999_v44, %v1735_v32  ;;  %v2000_v36 = vld [vmem:[#allocation17_spill] sm:$0xff] }
 0x23c   : > { %828 = vmatpush.bf16.msrb.mxu2 %v768_v17  ;;  %v1268_v43 = vpop.eup %1267  ;;  %1279 = vpow2.f32 %v686_v50  ;;  %v577_v10 = vsub.f32 %v1998_v47, %v1735_v32  ;;  %v627_v37 = vsub.f32 %v2000_v36, %v1735_v32  ;;  %v1147_v52 = vld [vmem:[%s1507_s3 + $0x24] sm:$0xf] }
 0x23d   : > { %v1270_v31 = vpop.eup %1269  ;;  %1281 = vpow2.f32 %v690_v62  ;;  %v750_v62 = vmul.f32 1.442695, %v629_v5  ;;  %v1150_v5 = vld [vmem:[%s1507_s3 + $0x34] sm:$0xf0] }
 0x23e   : > { %v1272_v24 = vpop.eup %1271  ;;  %1283 = vpow2.f32 %v716_v53  ;;  %848 = vmatpush.bf16.msrb.mxu3 %v790_v56  ;;  %v788_v48 = vpack.c.bf16 %v1270_v31, %v1268_v43  ;;  %v754_v53 = vmul.f32 1.442695, %v631_v45  ;;  %v2002_v56 = vld [vmem:[#allocation5_spill] sm:$0xff]  ;;  %v646_v19 = vmul.f32 1.442695, %v577_v10 }
 0x23f   : > { %v1274_v57 = vpop.eup %1273  ;;  %1285 = vpow2.f32 %v720_v6  ;;  %v764_v42 = vpack.c.bf16 %v1272_v24, %v1266_v4  ;;  %v2001_v6 = vld [vmem:[#allocation8_spill] sm:$0xff]  ;;  %v573_v31 = vsub.f32 %v2002_v56, %v1735_v32  ;;  %v738_v45 = vmul.f32 1.442695, %v623_v13  ;;  %v1149_v13 = vld [vmem:[%s1507_s3 + $0x34] sm:$0xf] }
 0x240   : > { %829 = vmatpush.bf16.msrb.mxu2 %v766_v58  ;;  %v1276_v33 = vpop.eup %1275  ;;  %1287 = vpow2.f32 %v678_v20  ;;  %v779_v30 = vpack.c.bf16 %v1274_v57, %v1795_v34  ;;  %v1997_v34 = vld [vmem:[#allocation9_spill] sm:$0xff]  ;;  %v579_v43 = vsub.f32 %v2001_v6, %v1735_v32  ;;  %v2003_v24 = vld [vmem:[#allocation12_spill] sm:$0xff]  ;;  %v1883_v47 = vor.u32 %v1150_v5, %v1127_v14 }
 0x241   : > { %v1278_v26 = vpop.eup %1277  ;;  %1289 = vpow2.f32 %v682_v46  ;;  %v583_v0 = vsub.f32 %v1997_v34, %v1735_v32  ;;  %v621_v39 = vsub.f32 %v2003_v24, %v1735_v32  ;;  %v2011_v24 = vld [vmem:[#allocation15_spill] sm:$0xff] }
 0x242   : > { %v1280_v15 = vpop.eup %1279  ;;  %1291 = vpow2.f32 %v708_v28  ;;  %849 = vmatpush.bf16.msrb.mxu3 %v788_v48  ;;  %v786_v8 = vpack.c.bf16 %v1278_v26, %v1276_v33  ;;  %v742_v28 = vmul.f32 1.442695, %v625_v38  ;;  %v2005_v33 = vld [vmem:[#allocation6_spill] sm:$0xff]  ;;  %v638_v26 = vmul.f32 1.442695, %v573_v31  ;;  %v2009_v38 = vld [vmem:[#allocation20_spill] sm:$0xff] }
 0x243   : > { %v1282_v27 = vpop.eup %1281  ;;  %1293 = vpow2.f32 %v712_v18  ;;  %v658_v63 = vmul.f32 1.442695, %v583_v0  ;;  %v746_v18 = vmul.f32 1.442695, %v627_v37  ;;  %v575_v23 = vsub.f32 %v2005_v33, %v1735_v32 }
 0x244   : > { %830 = vmatpush.bf16.msrb.mxu2 %v764_v42  ;;  %v1284_v7 = vpop.eup %1283  ;;  %1295 = vpow2.f32 %v670_v12  ;;  %v777_v50 = vpack.c.bf16 %v1282_v27, %v1280_v15  ;;  %v650_v12 = vmul.f32 1.442695, %v579_v43  ;;  %v734_v27 = vmul.f32 1.442695, %v621_v39 }
 0x245   : > { %v1286_v41 = vpop.eup %1285  ;;  %1297 = vpow2.f32 %v674_v49  ;;  %v1121_v49 = vld [vmem:[%s1507_s3 + $0x28] sm:$0xf0]  ;;  %v607_v39 = vsub.f32 %v2011_v24, %v1735_v32 }
 0x246   : > { %v1288_v1 = vpop.eup %1287  ;;  %1299 = vpow2.f32 %v700_v22  ;;  %850 = vmatpush.bf16.msrb.mxu3 %v786_v8  ;;  %v784_v4 = vpack.c.bf16 %v1286_v41, %v1284_v7  ;;  %v2006_v22 = vld [vmem:[#allocation10_spill] sm:$0xff]  ;;  %v2007_v7 = vld [vmem:[#allocation11_spill] sm:$0xff]  ;;  %v642_v41 = vmul.f32 1.442695, %v575_v23  ;;  %v1880_v0 = vor.u32 %v1147_v52, %v1121_v49 }
 0x247   : > { %831 = vmatmul.bf16.vlgmr.msrb.gmra.mxu2 %v1846_v9  ;;  %v1290_v60 = vpop.eup %1289  ;;  %1301 = vpow2.f32 %v704_v21  ;;  %v619_v55 = vsub.f32 %v2007_v7, %v1735_v32  ;;  %v706_v23 = vmul.f32 1.442695, %v607_v39 }
 0x248   : > { %869 = vmatpush.bf16.msra.mxu2 %v779_v30  ;;  %v1292_v17 = vpop.eup %1291  ;;  %1303 = vpow2.f32 %v758_v35  ;;  %v775_v46 = vpack.c.bf16 %v1290_v60, %v1288_v1  ;;  %v617_v30 = vsub.f32 %v2006_v22, %v1735_v32 }
 0x249   : > { %v1294_v61 = vpop.eup %1293  ;;  %1305 = vpow2.f32 %v666_v2 }
 0x24a   : > { %v1296_v20 = vpop.eup %1295  ;;  %1307 = vpow2.f32 %v654_v3  ;;  %851 = vmatpush.bf16.msrb.mxu3 %v784_v4  ;;  %v782_v59 = vpack.c.bf16 %v1294_v61, %v1292_v17  ;;  %v2008_v3 = vld [vmem:[#allocation18_spill] sm:$0xff]  ;;  %v726_v60 = vmul.f32 1.442695, %v617_v30 }
 0x24b   : > { %v1298_v58 = vpop.eup %1297  ;;  %1309 = vpow2.f32 %v750_v62  ;;  %v730_v62 = vmul.f32 1.442695, %v619_v55 }
 0x24c   : > { %870 = vmatpush.bf16.msra.mxu2 %v777_v50  ;;  %v1300_v57 = vpop.eup %1299  ;;  %1311 = vpow2.f32 %v754_v53  ;;  %v773_v42 = vpack.c.bf16 %v1298_v58, %v1296_v20  ;;  %v613_v50 = vsub.f32 %v2008_v3, %v1735_v32  ;;  %v206_v58 = vld [vmem:[%s1507_s3 + $0x40] sm:$0x11] }
 0x24d   : > { %v1302_v25 = vpop.eup %1301  ;;  %1313 = vpow2.f32 %v658_v63  ;;  %v810_v30 = vunpack.c.h.b16 %v206_v58 }
 0x24e   : > { %v1304_v48 = vpop.eup %1303  ;;  %1315 = vpow2.f32 %v646_v19  ;;  %852 = vmatpush.bf16.msrb.mxu3 %v782_v59  ;;  %v780_v35 = vpack.c.bf16 %v1302_v25, %v1300_v57  ;;  %v718_v4 = vmul.f32 1.442695, %v613_v50  ;;  %v2010_v19 = vld [vmem:[#allocation13_spill] sm:$0xff]  ;;  %v809_v25 = vunpack.c.l.b16 %v206_v58 }
 0x24f   : > { %v1306_v15 = vpop.eup %1305  ;;  %1317 = vpow2.f32 %v742_v28  ;;  %v795_v34 = vpack.c.bf16 %v1783_v54, %v1304_v48  ;;  %v615_v54 = vsub.f32 %v2009_v38, %v1735_v32 }
 0x250   : > { %871 = vmatpush.bf16.msra.mxu2 %v775_v46  ;;  %v1308_v21 = vpop.eup %1307  ;;  %1319 = vpow2.f32 %v746_v18  ;;  %v771_v1 = vpack.c.bf16 %v1306_v15, %v1791_v40  ;;  %v605_v46 = vsub.f32 %v2010_v19, %v1735_v32  ;;  %v1129_v18 = vld [vmem:[%s1507_s3 + $0x38] sm:$0xf0]  ;;  %v815_v49 = vpack.c.b16 %v809_v25, %v809_v25 }
 0x251   : > { %v1310_v8 = vpop.eup %1309  ;;  %1321 = vpow2.f32 %v650_v12  ;;  %v722_v6 = vmul.f32 1.442695, %v615_v54 }
 0x252   : > { %v1312_v2 = vpop.eup %1311  ;;  %1323 = vpow2.f32 %v638_v26  ;;  %853 = vmatpush.bf16.msrb.mxu3 %v780_v35  ;;  %v702_v33 = vmul.f32 1.442695, %v605_v46  ;;  %v1132_v26 = vor.u32 %v1149_v13, %v1129_v18 }
 0x253   : > { %v1314_v10 = vpop.eup %1313  ;;  %1325 = vpow2.f32 %v734_v27  ;;  %v793_v36 = vpack.c.bf16 %v1312_v2, %v1310_v8  ;;  %v816_v27 = vpack.c.b16 %v810_v30, %v810_v30 }
 0x254   : > { %872 = vmatpush.bf16.msra.mxu2 %v773_v42  ;;  %v1316_v44 = vpop.eup %1315  ;;  %1327 = vpow2.f32 %v738_v45  ;;  %v769_v37 = vpack.c.bf16 %v1314_v10, %v1308_v21 }
 0x255   : > { %v1318_v17 = vpop.eup %1317  ;;  %1329 = vpow2.f32 %v642_v41  ;;  %854 = vmatmul.bf16.vlgmr.msrb.gmra.mxu3 %v1880_v0 }
 0x256   : > { %892 = vmatpush.bf16.msra.mxu3 %v795_v34  ;;  %v1320_v40 = vpop.eup %1319  ;;  %1331 = vpow2.f32 %v726_v60 }
 0x257   : > { %836 = vmatmul.bf16.gmra.mxu2 %v1883_v47  ;;  %v1322_v53 = vpop.eup %1321  ;;  %1333 = vpow2.f32 %v730_v62  ;;  %v791_v63 = vpack.c.bf16 %v1320_v40, %v1318_v17 }
 0x258   : > { %873 = vmatpush.bf16.msra.mxu2 %v771_v1  ;;  %v1324_v61 = vpop.eup %1323  ;;  %v767_v56 = vpack.c.bf16 %v1322_v53, %v1316_v44  ;;  %1335 = vpow2.f32 %v718_v4 }
 0x259   : > { %v1326_v43 = vpop.eup %1325  ;;  %1337 = vpow2.f32 %v722_v6 }
 0x25a   : > { %893 = vmatpush.bf16.msra.mxu3 %v793_v36  ;;  %v1328_v20 = vpop.eup %1327  ;;  %1339 = vpow2.f32 %v702_v33 }
 0x25b   : > { %v1330_v31 = vpop.eup %1329  ;;  %v789_v57 = vpack.c.bf16 %v1328_v20, %v1326_v43  ;;  %1341 = vpow2.f32 %v706_v23 }
 0x25c   : > { %874 = vmatpush.bf16.msra.mxu2 %v769_v37  ;;  %v1332_v28 = vpop.eup %1331  ;;  %v765_v59 = vpack.c.bf16 %v1330_v31, %v1324_v61 }
 0x25d   : > { %v1334_v11 = vpop.eup %1333 }
 0x25e   : > { %894 = vmatpush.bf16.msra.mxu3 %v791_v63  ;;  %v1336_v12 = vpop.eup %1335  ;;  %v787_v48 = vpack.c.bf16 %v1334_v11, %v1332_v28 }
 0x25f   : > { %v1338_v52 = vpop.eup %1337 }
 0x260   : > { %875 = vmatpush.bf16.msra.mxu2 %v767_v56  ;;  %v785_v32 = vpack.c.bf16 %v1338_v52, %v1336_v12  ;;  %v1340_v42 = vpop.eup %1339 }
 0x261   : > { %v1342_v15 = vpop.eup %1341 }
 0x262   : > { %895 = vmatpush.bf16.msra.mxu3 %v789_v57  ;;  %v781_v22 = vpack.c.bf16 %v1342_v15, %v1340_v42 }
 0x264   : > { %876 = vmatpush.bf16.msra.mxu2 %v765_v59 }
 0x265   : > { %859 = vmatmul.bf16.gmra.mxu3 %v1132_v26 }
 0x266   : > { %896 = vmatpush.bf16.msra.mxu3 %v787_v48 }
 0x267   : > { %841 = vmatmul.bf16.gmra.mxu2 %v815_v49 }
 0x26a   : > { %897 = vmatpush.bf16.msra.mxu3 %v785_v32 }
 0x26e   : > { %898 = vmatpush.bf16.msra.mxu3 %v783_v16 }
 0x272   : > { %899 = vmatpush.bf16.msra.mxu3 %v781_v22 }
 0x275   : > { %864 = vmatmul.bf16.gmra.mxu3 %v816_v27 }
 0x277   : > { %877 = vmatmul.bf16.vlgmr.msra.gmra.mxu2 %v1846_v9 }
 0x285   : > { %900 = vmatmul.bf16.vlgmr.msra.gmra.mxu3 %v1880_v0 }
 0x287   : > { %882 = vmatmul.bf16.gmra.mxu2 %v1883_v47 }
 0x295   : > { %905 = vmatmul.bf16.gmra.mxu3 %v1132_v26 }
 0x297   : > { %887 = vmatmul.bf16.gmra.mxu2 %v815_v49 }
 0x2a5   : > { %910 = vmatmul.bf16.gmra.mxu3 %v816_v27 }
 0x2ca   : > { %v832_v14 = vpop.f32.mrf.mxu2 }
 0x2d2   : > { %v834_v5 = vpop.f32.mrf.mxu2 }
 0x2d8   : > { %v855_v29 = vpop.f32.mrf.mxu3 }
 0x2d9   : > { %v856_v1 = vadd.f32 %v855_v29, %v832_v14 }
 0x2da   : > { %v837_v51 = vpop.f32.mrf.mxu2 }
 0x2e0   : > { %v857_v16 = vpop.f32.mrf.mxu3 }
 0x2e1   : > { %v858_v47 = vadd.f32 %v857_v16, %v834_v5 }
 0x2e2   : > { %v839_v21 = vpop.f32.mrf.mxu2 }
 0x2e8   : > { %v860_v7 = vpop.f32.mrf.mxu3 }
 0x2e9   : > { %v861_v10 = vadd.f32 %v860_v7, %v837_v51 }
 0x2ea   : > { %v842_v55 = vpop.f32.mrf.mxu2 }
 0x2f0   : > { %v862_v45 = vpop.f32.mrf.mxu3 }
 0x2f1   : > { %v863_v50 = vadd.f32 %v862_v45, %v839_v21 }
 0x2f2   : > { %v844_v35 = vpop.f32.mrf.mxu2 }
 0x2f8   : > { %v865_v9 = vpop.f32.mrf.mxu3 }
 0x2f9   : > { %v866_v8 = vadd.f32 %v865_v9, %v842_v55 }
 0x2fa   : > { %v878_v41 = vpop.f32.mrf.mxu2 }
 0x2fb   : > { %1343 = vrcp.f32 %v866_v8 }
 0x300   : > { %v867_v34 = vpop.f32.mrf.mxu3 }
 0x301   : > { %v1344_v0 = vpop.eup %1343 }
 0x302   : > { %v880_v2 = vpop.f32.mrf.mxu2  ;;  %v917_v3 = vperm.slane %v1344_v0, 0 }
 0x304   : > { %v919_v60 = vmul.f32 %v917_v3, %v856_v1  ;;  %v921_v44 = vmul.f32 %v917_v3, %v858_v47  ;;  %v923_v38 = vmul.f32 %v917_v3, %v861_v10  ;;  %v925_v54 = vmul.f32 %v917_v3, %v863_v50 }
 0x306   : > { %927 = vst [vmem:[%s1907_s6] sm:$0xff] %v919_v60 }
 0x307   : > { %929 = vst [vmem:[%s1907_s6 + $0x10] sm:$0xff] %v921_v44 }
 0x308   : > { %931 = vst [vmem:[%s1907_s6 + $0x20] sm:$0xff] %v923_v38  ;;  %v901_v62 = vpop.f32.mrf.mxu3 }
 0x309   : > { %933 = vst [vmem:[%s1907_s6 + $0x30] sm:$0xff] %v925_v54  ;;  %v902_v56 = vadd.f32 %v901_v62, %v878_v41 }
 0x30a   : > { %v883_v17 = vpop.f32.mrf.mxu2 }
 0x310   : > { %v903_v36 = vpop.f32.mrf.mxu3 }
 0x311   : > { %v904_v31 = vadd.f32 %v903_v36, %v880_v2 }
 0x312   : > { %v885_v40 = vpop.f32.mrf.mxu2 }
 0x318   : > { %v906_v37 = vpop.f32.mrf.mxu3 }
 0x319   : > { %v907_v19 = vadd.f32 %v906_v37, %v883_v17 }
 0x31a   : > { %v888_v53 = vpop.f32.mrf.mxu2 }
 0x320   : > { %v908_v4 = vpop.f32.mrf.mxu3 }
 0x321   : > { %v909_v58 = vadd.f32 %v908_v4, %v885_v40 }
 0x322   : > { %v890_v61 = vpop.f32.mrf.mxu2 }
 0x328   : > { %v911_v6 = vpop.f32.mrf.mxu3 }
 0x329   : > { %v912_v43 = vadd.f32 %v911_v6, %v888_v53 }
 0x32b   : > { %1345 = vrcp.f32 %v912_v43 }
 0x330   : > { %v913_v63 = vpop.f32.mrf.mxu3 }
 0x331   : > { %v1346_v20 = vpop.eup %1345 }
 0x332   : > { %v918_v46 = vperm.slane %v1346_v20, 0 }
 0x334   : > { %v920_v24 = vmul.f32 %v918_v46, %v902_v56  ;;  %v922_v39 = vmul.f32 %v918_v46, %v904_v31  ;;  %v924_v28 = vmul.f32 %v918_v46, %v907_v19  ;;  %v926_v57 = vmul.f32 %v918_v46, %v909_v58 }
 0x336   : > { %928 = vst [vmem:[%s1907_s6 + $0x8] sm:$0xff] %v920_v24 }
 0x337   : > { %930 = vst [vmem:[%s1907_s6 + $0x18] sm:$0xff] %v922_v39 }
 0x338   : > { %932 = vst [vmem:[%s1907_s6 + $0x28] sm:$0xff] %v924_v28 }
 0x339   : > { %934 = vst [vmem:[%s1907_s6 + $0x38] sm:$0xff] %v926_v57 }
 0x33a   : > { %1374 = shalt.err (!%p1371_p5)
}
 0x33b   : > { %s1427_s30 = smov 256   ;;  %s1428_s3 = smov 16  }
 0x33c   : > { %1157 = dma.vmem_to_hbm [thread:$0]  (%p1484_p4), %s951_s18, 1024, %s953_s20, %s936_s12, %s1427_s30, %s1427_s30, %s1428_s3  }
 0x33d PF: > { %p1163_p6 = scmp.ge.s32.totalorder %s1425_s14, 2  ;;  %s967_s4 = sand.u32 1, %s1405_s9  }
 0x33e   : > { %s968_s5 = scalar_lea.sflag [#allocation3], %s967_s4 }
 0x33f   : > { %p1160_p7 = pnand %p1163_p6, %p1491_p8 }
 0x341   : > { %p1161_p9 = pneg %p1160_p7 }
 0x343   : > { %1400 = dma.done.wait (%p1161_p9), %s968_s5, 1024  }
 0x344   : > { %1402 = vsyncadd (%p1161_p9), %s968_s5, 4294966272  ;;  %s15_s14 = sadd.s32 1, %s1425_s14   ;;  %s2012_s9 = smov %s1409_s10 }
 0x345   : > { %p12_p10 = scmp.ge.s32.totalorder %s15_s14, 4   ;;  %s2013_s10 = smov %s1413_s11 }
 0x346   : > { %s2014_s11 = smov %s1497_s22  ;;  %s2015_s12 = smov %s1421_s13 }
 0x347   : > { %s2016_s13 = smov %s2018_s17  ;;  %14 = sbr.rel (!%p12_p10) target bundleno = 4 (0x4), region = 66 }
 0x34c   :  { %974 = vsyncpa [#allocation3], 1 }
 0x34d   :  { %976 = vsyncpa [#allocation3 + $0x1], 1 }

</bundles_post_ra>
